<compile_context>
chip_gen: v5e
topology: v5e:2x2
jax: 0.10.0
libtpu: 0.0.40
codegen_flags: <defaults>
</compile_context>

<pallas_src>
import jax
import jax.numpy as jnp
from jax.experimental import pallas as pl
from jax.experimental.pallas import tpu as pltpu

LANES = 128
SUBLANES = 8
MAX_TILE_ROWS = 2048  # (2048, 128) f32 tile = 1 MiB per input stream


def _round_up(v, m):
    return pl.cdiv(v, m) * m


def _bce_sum_kernel(x_ref, t_ref, out_ref, acc_ref):
    i = pl.program_id(1)

    @pl.when(i == 0)
    def _():
        acc_ref[...] = jnp.zeros_like(acc_ref)

    x = x_ref[...].astype(jnp.float32)
    t = t_ref[...].astype(jnp.float32)
    # Numerically-stable BCE-with-logits (matches PyTorch):
    #   max(x, 0) - x*t + log(1 + exp(-|x|))
    acc_ref[...] += jnp.maximum(x, 0.0) - x * t + jnp.log1p(jnp.exp(-jnp.abs(x)))

    @pl.when(i == pl.num_programs(1) - 1)
    def _():
        # Single cross-lane reduce, broadcast into this shard's output block.
        out_ref[...] = jnp.full(out_ref.shape, jnp.sum(acc_ref[...]), jnp.float32)


def focal_loss(inputs, targets, alpha=0.25, gamma=2.0):
    """Pallas implementation of FocalLoss.forward. Returns an f32 scalar."""
    assert inputs.shape == targets.shape
    n = inputs.size
    assert n > 0, "focal_loss: empty input"

    x = inputs.reshape(-1)
    t = targets.reshape(-1)

    rows = pl.cdiv(n, LANES)
    # Shard across 2 cores (helps v7x megacore) only when there is enough work.
    n_shards = 2 if rows > MAX_TILE_ROWS else 1
    rows_per_shard = pl.cdiv(rows, n_shards)
    steps = pl.cdiv(rows_per_shard, MAX_TILE_ROWS)
    tile_rows = _round_up(pl.cdiv(rows_per_shard, steps), SUBLANES)
    total_rows = n_shards * steps * tile_rows

    pad = total_rows * LANES - n
    if pad:
        # Pad logits with a large positive value and targets with 1 so every
        # padded element contributes exactly 0 to the BCE sum (no mask stream,
        # no correction term). Skipped entirely when shapes already divide.
        x = jnp.concatenate([x, jnp.full((pad,), 1e4, x.dtype)])
        t = jnp.concatenate([t, jnp.ones((pad,), t.dtype)])

    x2 = x.reshape(total_rows, LANES)
    t2 = t.reshape(total_rows, LANES)

    in_spec = pl.BlockSpec((tile_rows, LANES), lambda p, i: (p * steps + i, 0))

    cost = pl.CostEstimate(
        flops=6 * n,
        transcendentals=2 * n,
        bytes_accessed=int(
            x2.size * x2.dtype.itemsize
            + t2.size * t2.dtype.itemsize
            + n_shards * SUBLANES * LANES * 4
        ),
    )

    partials = pl.pallas_call(
        _bce_sum_kernel,
        out_shape=jax.ShapeDtypeStruct((n_shards * SUBLANES, LANES), jnp.float32),
        grid_spec=pltpu.PrefetchScalarGridSpec(
            num_scalar_prefetch=0,
            grid=(n_shards, steps),
            in_specs=[in_spec, in_spec],
            out_specs=pl.BlockSpec((SUBLANES, LANES), lambda p, i: (p, 0)),
            scratch_shapes=[pltpu.VMEM((tile_rows, LANES), jnp.float32)],
        ),
        compiler_params=pltpu.CompilerParams(
            dimension_semantics=("parallel", "arbitrary"),
        ),
        cost_estimate=cost,
    )(x2, t2)

    # One scalar per shard (broadcast over its (8,128) output block).
    shard_sums = partials.reshape(n_shards, SUBLANES, LANES)[:, 0, 0]
    mean_bce = jnp.sum(shard_sums) / jnp.float32(n)
    return (
        jnp.float32(alpha)
        * (1.0 - jnp.exp(-mean_bce)) ** jnp.float32(gamma)
        * mean_bce
    )


def _focal_loss_ref(inputs, targets, alpha=0.25, gamma=2.0):
    x = inputs.astype(jnp.float32).reshape(-1)
    t = targets.astype(jnp.float32).reshape(-1)
    bce = jnp.mean(jnp.maximum(x, 0.0) - x * t + jnp.log1p(jnp.exp(-jnp.abs(x))))
    return alpha * (1.0 - jnp.exp(-bce)) ** gamma * bce


def _check(shape, k1, k2):
    inputs = jax.random.normal(k1, shape, dtype=jnp.float32)
    targets = (jax.random.uniform(k2, shape) > 0.5).astype(jnp.float32)
    loss = focal_loss(inputs, targets, alpha=0.25, gamma=2.0)
    jax.block_until_ready(loss)
    ref = _focal_loss_ref(inputs, targets, alpha=0.25, gamma=2.0)
    assert jnp.allclose(loss, ref, rtol=1e-5, atol=1e-6), (shape, loss, ref)


if __name__ == "__main__":
    key = jax.random.PRNGKey(0)
    k1, k2, k3, k4, k5, k6 = jax.random.split(key, 6)

    # Primary small NCHW case (logits + binary targets), as the module expects.
    _check((2, 4, 16, 16), k1, k2)
    # Odd size -> exercises the padded-tail path.
    _check((2, 3, 37, 53), k3, k4)
    # Larger size -> exercises the 2-shard ("parallel") path.
    _check((1, 3, 320, 320), k5, k6)

    print("KERNEL_OK")
</pallas_src>

<mosaic_0001>
module attributes {stable_mosaic.version = 11 : i64} {
  func.func @_bce_sum_kernel(%arg0: i32, %arg1: i32, %arg2: memref<16x128xf32, #tpu.memory_space<vmem>>, %arg3: memref<16x128xf32, #tpu.memory_space<vmem>>, %arg4: memref<8x128xf32, #tpu.memory_space<vmem>>, %arg5: memref<16x128xf32, #tpu.memory_space<vmem>>) attributes {dimension_semantics = [#tpu.dimension_semantics<parallel>, #tpu.dimension_semantics<arbitrary>], iteration_bounds = array<i64: 1, 1>, scalar_prefetch = 0 : i64, scratch_operands = 1 : i64, tpu.core_type = #tpu.core_type<tc>, window_params = [{transform_indices = @transform_0, window_bounds = array<i64: 16, 128>}, {transform_indices = @transform_1, window_bounds = array<i64: 16, 128>}, {transform_indices = @transform_2, window_bounds = array<i64: 8, 128>}]} {
    %c0_i32 = arith.constant 0 : i32
    %0 = arith.cmpi eq, %arg1, %c0_i32 : i32
    %1 = arith.extui %0 : i1 to i32
    %c0_i32_0 = arith.constant 0 : i32
    %2 = arith.cmpi ne, %1, %c0_i32_0 : i32
    scf.if %2 {
      %cst_11 = arith.constant 0.000000e+00 : f32
      %21 = vector.broadcast %cst_11 : f32 to vector<16x128xf32>
      %c0_12 = arith.constant 0 : index
      %c0_13 = arith.constant 0 : index
      %22 = vector.load %arg5[%c0_12, %c0_13] : memref<16x128xf32, #tpu.memory_space<vmem>>, vector<16x128xf32>
      tpu.vector_store %arg5[%c0_12, %c0_13], %21 {strides = array<i32>} : memref<16x128xf32, #tpu.memory_space<vmem>>, vector<16x128xf32>,
    } else {
    }
    %c0 = arith.constant 0 : index
    %c0_1 = arith.constant 0 : index
    %3 = vector.load %arg2[%c0, %c0_1] : memref<16x128xf32, #tpu.memory_space<vmem>>, vector<16x128xf32>
    %c0_2 = arith.constant 0 : index
    %c0_3 = arith.constant 0 : index
    %4 = vector.load %arg3[%c0_2, %c0_3] : memref<16x128xf32, #tpu.memory_space<vmem>>, vector<16x128xf32>
    %c0_4 = arith.constant 0 : index
    %c0_5 = arith.constant 0 : index
    %5 = vector.load %arg5[%c0_4, %c0_5] : memref<16x128xf32, #tpu.memory_space<vmem>>, vector<16x128xf32>
    %cst = arith.constant 0.000000e+00 : f32
    %6 = vector.broadcast %cst : f32 to vector<16x128xf32>
    %7 = arith.maximumf %3, %6 : vector<16x128xf32>
    %8 = arith.mulf %3, %4 : vector<16x128xf32>
    %9 = arith.subf %7, %8 : vector<16x128xf32>
    %10 = math.absf %3 : vector<16x128xf32>
    %cst_6 = arith.constant 0.000000e+00 : f32
    %11 = vector.broadcast %cst_6 : f32 to vector<16x128xf32>
    %12 = arith.subf %11, %10 : vector<16x128xf32>
    %13 = math.exp %12 : vector<16x128xf32>
    %14 = math.log1p %13 : vector<16x128xf32>
    %15 = arith.addf %9, %14 : vector<16x128xf32>
    %16 = arith.addf %5, %15 : vector<16x128xf32>
    %c0_7 = arith.constant 0 : index
    %c0_8 = arith.constant 0 : index
    %17 = vector.load %arg5[%c0_7, %c0_8] : memref<16x128xf32, #tpu.memory_space<vmem>>, vector<16x128xf32>
    tpu.vector_store %arg5[%c0_7, %c0_8], %16 {strides = array<i32>} : memref<16x128xf32, #tpu.memory_space<vmem>>, vector<16x128xf32>,
    %c0_i32_9 = arith.constant 0 : i32
    %18 = arith.cmpi eq, %arg1, %c0_i32_9 : i32
    %19 = arith.extui %18 : i1 to i32
    %c0_i32_10 = arith.constant 0 : i32
    %20 = arith.cmpi ne, %19, %c0_i32_10 : i32
    scf.if %20 {
      %c0_11 = arith.constant 0 : index
      %c0_12 = arith.constant 0 : index
      %21 = vector.load %arg5[%c0_11, %c0_12] : memref<16x128xf32, #tpu.memory_space<vmem>>, vector<16x128xf32>
      %22 = vector.shape_cast %21 : vector<16x128xf32> to vector<1x16x128xf32>
      %cst_13 = arith.constant dense<0.000000e+00> : vector<1xf32>
      %23 = vector.multi_reduction <add>, %22, %cst_13 [1, 2] : vector<1x16x128xf32> to vector<1xf32>
      %24 = vector.shape_cast %23 : vector<1xf32> to vector<1x1x1xf32>
      %25 = vector.extract %24[0, 0, 0] : f32 from vector<1x1x1xf32>
      %26 = vector.broadcast %25 : f32 to vector<8x128xf32>
      %c0_14 = arith.constant 0 : index
      %c0_15 = arith.constant 0 : index
      %27 = vector.load %arg4[%c0_14, %c0_15] : memref<8x128xf32, #tpu.memory_space<vmem>>, vector<8x128xf32>
      tpu.vector_store %arg4[%c0_14, %c0_15], %26 {strides = array<i32>} : memref<8x128xf32, #tpu.memory_space<vmem>>, vector<8x128xf32>,
    } else {
    }
    return
  }
  func.func @transform_0(%arg0: i32, %arg1: i32) -> (i32, i32) {
    %c1_i32 = arith.constant 1 : i32
    %0 = arith.muli %arg0, %c1_i32 : i32
    %1 = arith.addi %0, %arg1 : i32
    %c0_i32 = arith.constant 0 : i32
    %c0_i32_0 = arith.constant 0 : i32
    return %1, %c0_i32 : i32, i32
  }
  func.func @transform_1(%arg0: i32, %arg1: i32) -> (i32, i32) {
    %c1_i32 = arith.constant 1 : i32
    %0 = arith.muli %arg0, %c1_i32 : i32
    %1 = arith.addi %0, %arg1 : i32
    %c0_i32 = arith.constant 0 : i32
    %c0_i32_0 = arith.constant 0 : i32
    return %1, %c0_i32 : i32, i32
  }
  func.func @transform_2(%arg0: i32, %arg1: i32) -> (i32, i32) {
    %c0_i32 = arith.constant 0 : i32
    %c0_i32_0 = arith.constant 0 : i32
    return %arg0, %c0_i32 : i32, i32
  }
}

</mosaic_0001>

<bundles_post_ra>
// kernel: tpu_custom_call.1
= control target key start
LH: loop header
LB: loop body
LE: loop exit
PB: predicated region body
PF: predicated region fallthrough
CT: control target
= control target key end

     0   :  { %7 = vsyncpa [#allocation4], 0  ;;  %s263_s0 = inlined_call_operand.hbm [shape: f32[16,128], index: 0, kind: input, shape index: {}]   ;;  %s264_s1 = inlined_call_operand.hbm [shape: f32[16,128], index: 1, kind: input, shape index: {}]   ;;  %s265_s2 = inlined_call_operand.hbm [shape: f32[8,128], index: 2, kind: output, shape index: {}]  }
   0x1   :  { %8 = vsyncpa [#allocation7], 0 }
   0x2   :  { %9 = vsyncpa [#allocation5], 0  ;;  %s18_s11 = sshll.u32 %s263_s0, 4  ;;  %s234_s12 = smov [#allocation3]   ;;  %s19_s11 = int_to_ptr.hbm [resolvable:$true] %s18_s11 }
   0x3   :  { %s20_s13 = sshll.u32 %s234_s12, 4  ;;  %s35_s16 = sshll.u32 %s264_s1, 4  ;;  %s21_s13 = int_to_ptr.vmem [resolvable:$true] %s20_s13  ;;  %s36_s16 = int_to_ptr.hbm [resolvable:$true] %s35_s16 }
   0x4   :  { %s235_s17 = smov 128   ;;  %s236_s18 = smov 8  }
   0x5   :  { %26 = dma.hbm_to_vmem [thread:$0]  %s19_s11, 256, %s21_s13, [#allocation4], %s235_s17, %s235_s17, %s236_s18  }
   0x6   :  { %s237_s19 = smov [#allocation6]  }
   0x7   :  { %s37_s20 = sshll.u32 %s237_s19, 4  ;;  %s38_s20 = int_to_ptr.vmem [resolvable:$true] %s37_s20 }
   0x8   :  { %43 = dma.hbm_to_vmem [thread:$0]  %s36_s16, 256, %s38_s20, [#allocation7], %s235_s17, %s235_s17, %s236_s18  }
   0x9   :  { %228 = dma.done.wait [#allocation4], 256  }
   0xa   :  { %229 = vsyncadd [#allocation4], 4294967040 }
   0xb   :  { %230 = dma.done.wait [#allocation7], 256  }
   0xc   :  { %231 = vsyncadd [#allocation7], 4294967040  ;;  %v62_v0 = vld [vmem:[#allocation3] sm:$0xff]  ;;  %v63_v1 = vld [vmem:[#allocation3 + $0x8] sm:$0xff]  ;;  %s238_s0 = smov [#allocation8]   ;;  %s130_s23 = sshll.u32 %s265_s2, 4  ;;  %s131_s23 = int_to_ptr.hbm [resolvable:$true] %s130_s23 }
   0xd   :  { %v74_v2 = vand.u32 2147483647, %v62_v0  ;;  %v75_v3 = vand.u32 2147483647, %v63_v1  ;;  %v64_v12 = vld [vmem:[#allocation6] sm:$0xff]  ;;  %v65_v15 = vld [vmem:[#allocation6 + $0x8] sm:$0xff] }
   0xe   :  { %v68_v17 = vmax.f32 %v62_v0, 0.0  ;;  %v70_v18 = vmul.f32 %v64_v12, %v62_v0  ;;  %v69_v21 = vmax.f32 %v63_v1, 0.0  ;;  %v71_v22 = vmul.f32 %v65_v15, %v63_v1  ;;  %s128_s1 = sshll.u32 %s238_s0, 4  ;;  %s129_s1 = int_to_ptr.vmem [resolvable:$true] %s128_s1 }
   0xf   :  { %v76_v4 = vsub.f32 0.0, %v74_v2  ;;  %v77_v5 = vsub.f32 0.0, %v75_v3 }
  0x10   :  { %v72_v26 = vsub.f32 %v68_v17, %v70_v18  ;;  %v73_v29 = vsub.f32 %v69_v21, %v71_v22 }
  0x11   :  { %v78_v6 = vmul.f32 1.442695, %v76_v4  ;;  %v80_v7 = vmul.f32 1.442695, %v77_v5 }
  0x13   :  { %148 = vpow2.f32 %v78_v6 }
  0x14   :  { %150 = vpow2.f32 %v80_v7 }
  0x19   :  { %v149_v8 = vpop.eup %148 }
  0x1a   :  { %v151_v9 = vpop.eup %150  ;;  %v82_v10 = vadd.f32 1.0, %v149_v8  ;;  %v85_v11 = vmul.f32 -0.5, %v149_v8  ;;  %v88_v19 = vand.u32 2147483647, %v149_v8 }
  0x1b   :  { %v91_v13 = vadd.f32 1.0, %v151_v9  ;;  %v94_v14 = vmul.f32 -0.5, %v151_v9  ;;  %v97_v23 = vand.u32 2147483647, %v151_v9 }
  0x1c   :  { %152 = vlog2.f32 %v82_v10  ;;  %v86_v16 = vadd.f32 1.0, %v85_v11  ;;  %vm89_vm0 = vcmp.lt.f32.partialorder %v88_v19, 0.0004427343 }
  0x1d   :  { %154 = vlog2.f32 %v91_v13  ;;  %v95_v20 = vadd.f32 1.0, %v94_v14  ;;  %vm98_vm1 = vcmp.lt.f32.partialorder %v97_v23, 0.0004427343 }
  0x1e   :  { %v87_v24 = vmul.f32 %v149_v8, %v86_v16 }
  0x1f   :  { %v96_v27 = vmul.f32 %v151_v9, %v95_v20 }
  0x22   :  { %v153_v25 = vpop.eup %152 }
  0x23   :  { %v155_v28 = vpop.eup %154  ;;  %v84_v30 = vmul.f32 0.6931472, %v153_v25 }
  0x24   :  { %v93_v31 = vmul.f32 0.6931472, %v155_v28 }
  0x25   :  { %v90_v32 = vsel %vm89_vm0, %v87_v24, %v84_v30 }
  0x26   :  { %v99_v33 = vsel %vm98_vm1, %v96_v27, %v93_v31  ;;  %v100_v34 = vadd.f32 %v90_v32, %v72_v26 }
  0x27   :  { %v101_v35 = vadd.f32 %v99_v33, %v73_v29 }
  0x29   :  { %v111_v36 = vadd.f32 %v101_v35, %v100_v34 }
  0x2b   :  { %112 = vadd.xlane.f32.xlu0 %v111_v36 }
  0x9e   :  { %v113_v37 = vpop.xlane.xlu0 %112 }
  0x9f   :  { %v114_v38 = vrot.slane %v113_v37, 4 }
  0xa1   :  { %v115_v39 = vadd.f32 %v114_v38, %v113_v37 }
  0xa3   :  { %v116_v40 = vrot.slane %v115_v39, 2 }
  0xa5   :  { %v117_v41 = vadd.f32 %v116_v40, %v115_v39 }
  0xa7   :  { %v118_v42 = vrot.slane %v117_v41, 1 }
  0xa9   :  { %v119_v43 = vadd.f32 %v118_v42, %v117_v41 }
  0xab   :  { %141 = vpush %v119_v43 }
  0xdc   :  { %s142_s24 = spop %141 }
  0xdd   :  { %v121_v44 = vstv %s142_s24 }
  0xde   :  { %122 = vst [vmem:[#allocation8] sm:$0xff] %v121_v44 }
  0xdf   :  { %133 = dma.vmem_to_hbm [thread:$0]  %s129_s1, 128, %s131_s23, [#allocation5]  }
  0xe0   :  { %232 = dma.done.wait [#allocation5], 128  }
  0xe1   :  { %233 = vsyncadd [#allocation5], 4294967168 }
  0xe2   :  { %138 = vsyncpa [#allocation4], 1 }
  0xe3   :  { %139 = vsyncpa [#allocation7], 1 }
  0xe4   :  { %140 = vsyncpa [#allocation5], 1 }

</bundles_post_ra>
